<compile_context>
chip_gen: v6e
topology: v6e:2x2x1
jax: 0.10.0
libtpu: 0.0.40
codegen_flags: <defaults>
</compile_context>

<pallas_src>
import jax
import jax.numpy as jnp
from jax.experimental import pallas as pl
from jax.experimental.pallas import tpu as pltpu  # noqa: F401  (TPU backend)

_LANE = 128  # TPU vreg lane width


def _round_up(n: int, m: int) -> int:
    return ((n + m - 1) // m) * m


def rnn_cell_kernel(xh_ref, wf_ref, bf_ref, o_ref):
    """h_t = tanh([x_t, h_prev] @ [U^T; W^T] + (b_u + b_w)) -- one fused GEMM."""
    a = jnp.dot(xh_ref[...], wf_ref[...], preferred_element_type=jnp.float32)
    a = a + bf_ref[...]                            # [1, Hp] broadcasts over batch rows
    o_ref[...] = jnp.tanh(a).astype(o_ref.dtype)   # tanh lands on the EUP slot


def prepare_rnn_cell_params(u_w, u_b, w_w, w_b, *, dtype=jnp.float32):
    """Fuse + transpose + lane-pad the cell parameters ONCE (loop-invariant work).

    u_w: [H, I], w_w: [H, H]   (PyTorch nn.Linear layout: out x in)
    Returns  wf: [I + H, Hp],  bf: [1, Hp]   with Hp = round_up(H, 128).
    """
    H, I = u_w.shape
    Hp = _round_up(H, _LANE)
    wf = jnp.concatenate([u_w.T, w_w.T], axis=0).astype(dtype)   # [I+H, H]
    wf = jnp.pad(wf, ((0, 0), (0, Hp - H)))                      # [I+H, Hp]
    bf = (u_b + w_b).astype(jnp.float32).reshape(1, H)           # keep epilogue f32
    bf = jnp.pad(bf, ((0, 0), (0, Hp - H)))                      # [1, Hp]
    return wf, bf


@jax.jit
def rnn_cell_forward(x_t, h_prev, wf, bf):
    """x_t: [B, I], h_prev: [B, H], wf: [I+H, Hp], bf: [1, Hp]  ->  h_t: [B, H]."""
    B, I = x_t.shape
    H = h_prev.shape[1]
    K = I + H
    Hp = wf.shape[1]

    # Single fused LHS operand (tiny per-step concat; weights are untouched).
    xh = jnp.concatenate([x_t, h_prev], axis=1)                  # [B, I+H]

    full = lambda shape: pl.BlockSpec(shape, lambda: (0,) * len(shape))

    h_pad = pl.pallas_call(
        rnn_cell_kernel,
        out_shape=jax.ShapeDtypeStruct((B, Hp), x_t.dtype),
        grid=(),
        in_specs=[
            full((B, K)),     # [x_t, h_prev]
            full((K, Hp)),    # fused weight [U^T; W^T]  (lane-padded)
            full((1, Hp)),    # fused bias   b_u + b_w   (lane-padded, f32)
        ],
        out_specs=full((B, Hp)),   # Hp % 128 == 0 -> lane-dense, unmasked stores
    )(xh, wf, bf)
    return h_pad[:, :H]


# TODO(synk): for a full RNN over T timesteps, wrap this cell in a single
# pallas_call with grid=(T,) ("arbitrary"), weights resident via constant
# index_maps and h carried in VMEM scratch, to amortize launch + weight DMA.


if __name__ == "__main__":
    B, INPUT_SIZE, HIDDEN_SIZE = 8, 16, 32

    key = jax.random.PRNGKey(0)
    kx, kh, ku, kbu, kw, kbw = jax.random.split(key, 6)

    # Deterministic PyTorch-style uniform(-1/sqrt(fan_in), 1/sqrt(fan_in)) init.
    u_bound = 1.0 / (INPUT_SIZE ** 0.5)
    w_bound = 1.0 / (HIDDEN_SIZE ** 0.5)
    u_w = jax.random.uniform(ku, (HIDDEN_SIZE, INPUT_SIZE), jnp.float32,
                             -u_bound, u_bound)
    u_b = jax.random.uniform(kbu, (HIDDEN_SIZE,), jnp.float32, -u_bound, u_bound)
    w_w = jax.random.uniform(kw, (HIDDEN_SIZE, HIDDEN_SIZE), jnp.float32,
                             -w_bound, w_bound)
    w_b = jax.random.uniform(kbw, (HIDDEN_SIZE,), jnp.float32, -w_bound, w_bound)

    x_t = jax.random.normal(kx, (B, INPUT_SIZE), jnp.float32)
    h_prev = jax.random.normal(kh, (B, HIDDEN_SIZE), jnp.float32)

    # One-time (loop-invariant) parameter fusion / padding.
    wf, bf = prepare_rnn_cell_params(u_w, u_b, w_w, w_b)
    wf = jax.block_until_ready(wf)
    bf = jax.block_until_ready(bf)

    h_t = rnn_cell_forward(x_t, h_prev, wf, bf)
    h_t = jax.block_until_ready(h_t)

    # Pure-JAX reference check (matches the PyTorch forward).
    ref = jnp.tanh(x_t @ u_w.T + u_b + h_prev @ w_w.T + w_b)
    assert h_t.shape == (B, HIDDEN_SIZE)
    assert jnp.allclose(h_t, ref, atol=1e-5, rtol=1e-5)

    print("KERNEL_OK")
</pallas_src>

<mosaic_0001>
module attributes {stable_mosaic.version = 11 : i64} {
  func.func @rnn_cell_kernel(%arg0: memref<8x48xf32, #tpu.memory_space<vmem>>, %arg1: memref<48x128xf32, #tpu.memory_space<vmem>>, %arg2: memref<1x128xf32, #tpu.memory_space<vmem>>, %arg3: memref<8x128xf32, #tpu.memory_space<vmem>>) attributes {dimension_semantics = [], scalar_prefetch = 0 : i64, scratch_operands = 0 : i64, tpu.core_type = #tpu.core_type<tc>} {
    %c0 = arith.constant 0 : index
    %c0_0 = arith.constant 0 : index
    %0 = vector.load %arg0[%c0, %c0_0] : memref<8x48xf32, #tpu.memory_space<vmem>>, vector<8x48xf32>
    %c0_1 = arith.constant 0 : index
    %c0_2 = arith.constant 0 : index
    %1 = vector.load %arg1[%c0_1, %c0_2] : memref<48x128xf32, #tpu.memory_space<vmem>>, vector<48x128xf32>
    %cst = arith.constant dense<0.000000e+00> : vector<8x128xf32>
    %2 = tpu.matmul %0, %1, %cst {dimension_numbers = #tpu.dot_dimension_numbers<[1], [0], [0], [1], [0, 0, 1, 1], [], []>} : vector<8x48xf32>, vector<48x128xf32>, vector<8x128xf32> -> vector<8x128xf32>
    %c0_3 = arith.constant 0 : index
    %c0_4 = arith.constant 0 : index
    %3 = vector.load %arg2[%c0_3, %c0_4] : memref<1x128xf32, #tpu.memory_space<vmem>>, vector<1x128xf32>
    %4 = vector.broadcast %3 : vector<1x128xf32> to vector<8x128xf32>
    %5 = arith.addf %2, %4 : vector<8x128xf32>
    %6 = math.tanh %5 : vector<8x128xf32>
    %c0_5 = arith.constant 0 : index
    %c0_6 = arith.constant 0 : index
    %7 = vector.load %arg3[%c0_5, %c0_6] : memref<8x128xf32, #tpu.memory_space<vmem>>, vector<8x128xf32>
    tpu.vector_store %arg3[%c0_5, %c0_6], %6 {strides = array<i32>} : memref<8x128xf32, #tpu.memory_space<vmem>>, vector<8x128xf32>,
    return
  }
}

</mosaic_0001>

<bundles_post_ra>
// kernel: rnn_cell_forward.1
= control target key start
LH: loop header
LB: loop body
LE: loop exit
PB: predicated region body
PF: predicated region fallthrough
CT: control target
= control target key end

     0   :  { %8 = vsyncpa [#allocation3], 0  ;;  %s248_s0 = inlined_call_operand.vmem [shape: f32[8,48], index: 0, kind: input, shape index: {}]   ;;  %s249_s1 = inlined_call_operand.hbm [shape: f32[48,128], index: 1, kind: input, shape index: {}]   ;;  %s250_s2 = inlined_call_operand.vmem [shape: f32[1,128], index: 2, kind: input, shape index: {}]   ;;  %s251_s3 = inlined_call_operand.hbm [shape: f32[8,128], index: 3, kind: output, shape index: {}]  }
   0x1   :  { %9 = vsyncpa [#allocation4], 0  ;;  %s210_s12 = smov [#allocation2]  }
   0x2   :  { %s17_s13 = sshll.u32 %s210_s12, 4  ;;  %s18_s13 = int_to_ptr.vmem [resolvable:$true] %s17_s13 }
   0x3   :  { %s174_s14 = scalar_lea.vmem %s18_s13, 768  ;;  %p179_p1 = scmp.lt.s32.totalorder %s18_s13, %s18_s13 }
   0x4   :  { %p175_p0 = scmp.ne.s32.totalorder %s18_s13, %s174_s14  ;;  %p180_p2 = scmp.lt.s32.totalorder %s174_s14, %s174_s14 }
   0x6   :  { %p181_p3 = por %p180_p2, %p179_p1 }
   0x8   :  { %p182_p4 = pnand %p181_p3, %p175_p0 }
   0xa   :  { %185 = shalt.err (!%p182_p4)
}
   0xb   :  { %s211_s15 = smov 128   ;;  %s212_s16 = smov 8  }
   0xc   :  { %23 = dma.hbm_to_vmem [thread:$0]  %s249_s1, 768, %s18_s13, [#allocation3], %s211_s15, %s211_s15, %s212_s16  }
   0xd   :  { %206 = dma.done.wait [#allocation3], 768  }
   0xe   :  { %207 = vsyncadd [#allocation3], 4294966528  ;;  %v213_v0 = vmov 0.0   ;;  %vm214_vm0 = vmmov 0   ;;  %v35_v1 = vld [vmem:[#allocation2 + $0x28] sm:$0xff]  ;;  %v34_v2 = vld [vmem:[#allocation2 + $0x20] sm:$0xff] }
   0xf   :  { %143 = vmatprep.subr.mxu0 %v213_v0  ;;  %155 = vmatprep.mubr.msk.f32.mxu0 %vm214_vm0, %v213_v0  ;;  %v33_v3 = vld [vmem:[#allocation2 + $0x18] sm:$0xff]  ;;  %v32_v4 = vld [vmem:[#allocation2 + $0x10] sm:$0xff]  ;;  %v31_v5 = vld [vmem:[#allocation2 + $0x8] sm:$0xff]  ;;  %vm43_vm1 = vcmask 392192   ;;  %s215_s22 = smov [#allocation5]  }
  0x10   :  { %144 = vmatpush3.msra.mxu0 %v35_v1  ;;  %v30_v6 = vld [vmem:[#allocation2] sm:$0xff]  ;;  %s125_s23 = sshll.u32 %s215_s22, 4  ;;  %s126_s23 = int_to_ptr.vmem [resolvable:$true] %s125_s23 }
  0x11   :  { %145 = vmatprep.subr.mxu0 %v213_v0  ;;  %v29_v7 = vld [vmem:[%s248_s0] sm:$0xff]  ;;  %s186_s24 = scalar_lea.vmem %s126_s23, 128  ;;  %p191_p6 = scmp.lt.s32.totalorder %s126_s23, %s126_s23 }
  0x12   :  { %146 = vmatpush3.msra.mxu0 %v34_v2  ;;  %v134_v8 = vld [vmem:[%s250_s2] ss:$0 sm:$0xff]  ;;  %p187_p5 = scmp.ne.s32.totalorder %s126_s23, %s186_s24  ;;  %p192_p7 = scmp.lt.s32.totalorder %s186_s24, %s186_s24 }
  0x13   :  { %147 = vmatprep.subr.mxu0 %v213_v0 }
  0x14   :  { %148 = vmatpush3.msra.mxu0 %v33_v3  ;;  %p193_p8 = por %p192_p7, %p191_p6 }
  0x15   :  { %149 = vmatprep.subr.mxu0 %v213_v0 }
  0x16   :  { %150 = vmatpush3.msra.mxu0 %v32_v4  ;;  %p194_p9 = pnand %p193_p8, %p187_p5 }
  0x17   :  { %151 = vmatprep.subr.mxu0 %v213_v0 }
  0x18   :  { %152 = vmatpush3.msra.mxu0 %v31_v5 }
  0x19   :  { %153 = vmatprep.subr.mxu0 %v213_v0 }
  0x1a   :  { %154 = vmatpush3.msra.mxu0 %v30_v6 }
  0x1b   :  { %156 = vmatmul.mubr.msk.f32.vlgmr.msra.gmra.mxu0 %vm43_vm1, %v29_v7 }
  0xdb   :  { %v113_v9 = vpop.f32.mrf.mxu0 }
  0xdc   :  { %v114_v10 = vadd.f32 %v134_v8, %v113_v9 }
  0xdd   :  { %v157_v11 = vpop.f32.mrf.mxu0 }
  0xde   :  { %164 = vtanh.f32 %v114_v10 }
  0xeb   :  { %v165_v12 = vpop.eup %164 }
  0xec   :  { %118 = vst [vmem:[#allocation5] sm:$0xff] %v165_v12 }
  0xed   :  { %197 = shalt.err (!%p194_p9)
}
  0xee   :  { %128 = dma.vmem_to_hbm [thread:$0]  %s126_s23, 128, %s251_s3, [#allocation4]  }
  0xef   :  { %208 = dma.done.wait [#allocation4], 128  }
  0xf0   :  { %209 = vsyncadd [#allocation4], 4294967168 }
  0xf1   :  { %132 = vsyncpa [#allocation3], 1 }
  0xf2   :  { %133 = vsyncpa [#allocation4], 1 }

</bundles_post_ra>
